<compile_context>
chip_gen: v7x
topology: tpu7x:2x2x1
jax: 0.10.0
libtpu: 0.0.40
codegen_flags: <defaults>
</compile_context>

<pallas_src>
import collections
import functools
import math

import jax
import jax.numpy as jnp
from jax.experimental import pallas as pl
from jax.experimental.pallas import tpu as pltpu


# ---------------------------------------------------------------------------
# Generation-aware configuration
# ---------------------------------------------------------------------------
@functools.lru_cache(maxsize=None)
def _hw_config():
    """VMEM budget + tile targets derived from the actual TPU generation."""
    try:
        cap = int(pltpu.get_tpu_info().vmem_capacity_bytes)
    except Exception:
        cap = 64 * 1024 * 1024  # conservative fallback (v7x per-core VMEM)
    # Leave headroom for compiler-internal scratch / double buffering.
    vmem_limit = min((cap * 3) // 4, 112 * 1024 * 1024)
    big_vmem = cap > 96 * 1024 * 1024  # v5e/v6e (128 MiB) vs v7x (64 MiB)
    return {
        "vmem_limit": int(vmem_limit),
        "lin_tm": 512 if big_vmem else 256,
        "lin_tn": 512 if big_vmem else 256,
        "lin_tk": 512,
        "att_tq": 512 if big_vmem else 256,
        "att_tk": 1024 if big_vmem else 512,
    }


def _pick_tile(dim, target, align):
    """Largest tile <= target that is a multiple of `align` and divides `dim`.

    Falls back to the full dimension (full-extent blocks are always legal)."""
    if dim <= target:
        return dim
    t = (target // align) * align
    while t >= align:
        if dim % t == 0:
            return t
        t -= align
    return dim


# ---------------------------------------------------------------------------
# Kernel 1: tiled dense projection  y = x @ W
# ---------------------------------------------------------------------------
def _linear_kernel(x_ref, w_ref, o_ref, acc_ref):
    @pl.when(pl.program_id(2) == 0)
    def _():
        acc_ref[...] = jnp.zeros_like(acc_ref)

    acc_ref[...] += jnp.dot(
        x_ref[...], w_ref[...], preferred_element_type=jnp.float32
    )

    @pl.when(pl.program_id(2) == pl.num_programs(2) - 1)
    def _():
        o_ref[...] = acc_ref[...].astype(o_ref.dtype)


def linear(x, w, *, compute_dtype=None, out_dtype=None):
    """x: (M, K), w: (K, N) -> (M, N). f32 accumulation on the MXU."""
    M, K = x.shape
    K2, N = w.shape
    assert K == K2
    cd = compute_dtype or x.dtype
    od = out_dtype or cd
    xc = x.astype(cd)
    wc = w.astype(cd)

    cfg = _hw_config()
    tm = _pick_tile(M, cfg["lin_tm"], 16)    # sublane-aligned (bf16-safe)
    tn = _pick_tile(N, cfg["lin_tn"], 128)   # lane-aligned
    tk = _pick_tile(K, cfg["lin_tk"], 128)   # lane (x) / sublane (w) aligned
    grid = (M // tm, N // tn, K // tk)

    in_bytes = jnp.dtype(cd).itemsize
    cost = pl.CostEstimate(
        flops=2 * M * N * K,
        transcendentals=0,
        bytes_accessed=(M * K + K * N) * in_bytes
        + M * N * jnp.dtype(od).itemsize,
    )

    return pl.pallas_call(
        _linear_kernel,
        out_shape=jax.ShapeDtypeStruct((M, N), od),
        grid_spec=pltpu.PrefetchScalarGridSpec(
            num_scalar_prefetch=0,
            grid=grid,
            in_specs=[
                pl.BlockSpec((tm, tk), lambda i, j, k: (i, k)),
                pl.BlockSpec((tk, tn), lambda i, j, k: (k, j)),
            ],
            out_specs=pl.BlockSpec((tm, tn), lambda i, j, k: (i, j)),
            scratch_shapes=[pltpu.VMEM((tm, tn), jnp.float32)],
        ),
        compiler_params=pltpu.CompilerParams(
            dimension_semantics=("parallel", "parallel", "arbitrary"),
            vmem_limit_bytes=cfg["vmem_limit"],
        ),
        cost_estimate=cost,
    )(xc, wc)


# ---------------------------------------------------------------------------
# Kernel 2: flash-style attention over head-major (B*H, L, d_head) layout.
#   Heads live on the grid; scale is already folded into Wq.
# ---------------------------------------------------------------------------
def _flash_kernel(q_ref, k_ref, v_ref, o_ref, acc_ref, m_ref, l_ref,
                  *, mxu_dtype):
    j = pl.program_id(2)

    @pl.when(j == 0)
    def _():
        acc_ref[...] = jnp.zeros_like(acc_ref)
        m_ref[...] = jnp.full_like(m_ref, -jnp.inf)
        l_ref[...] = jnp.zeros_like(l_ref)

    # (tq, dh) / (tk, dh) blocks — MXU fed in mxu_dtype, f32 accumulation.
    q = q_ref[...].astype(mxu_dtype)
    k = k_ref[...].astype(mxu_dtype)

    s = jax.lax.dot_general(
        q, k, (((1,), (1,)), ((), ())),
        preferred_element_type=jnp.float32)          # (tq, tk), q@k^T

    m_prev = m_ref[...]                              # (tq, 1)
    l_prev = l_ref[...]                              # (tq, 1)
    m_new = jnp.maximum(m_prev, jnp.max(s, axis=-1, keepdims=True))
    alpha = jnp.exp(m_prev - m_new)
    p = jnp.exp(s - m_new)                           # (tq, tk) f32
    l_ref[...] = alpha * l_prev + jnp.sum(p, axis=-1, keepdims=True)
    m_ref[...] = m_new

    pv = jnp.dot(p.astype(mxu_dtype), v_ref[...].astype(mxu_dtype),
                 preferred_element_type=jnp.float32)  # (tq, dh)
    acc_ref[...] = alpha * acc_ref[...] + pv

    @pl.when(j == pl.num_programs(2) - 1)
    def _():
        # Exact divide (finalize is O(tq*dh), negligible; the approximate
        # reciprocal previously broke the 1e-3 correctness check).
        # TODO(synk): mask=None path only; attention-prob dropout is identity
        # at inference and therefore omitted.
        o_ref[...] = (acc_ref[...] / l_ref[...]).astype(o_ref.dtype)


def flash_attention(qh, kh, vh, *, mxu_dtype=None, out_dtype=None):
    """qh: (BH, Lq, dh), kh/vh: (BH, Lk, dh) -> (BH, Lq, dh)."""
    BH, Lq, dh = qh.shape
    Lk = kh.shape[1]
    od = out_dtype or qh.dtype
    md = mxu_dtype or qh.dtype

    cfg = _hw_config()
    tq = _pick_tile(Lq, cfg["att_tq"], 16)    # sublanes (bf16-safe)
    tk = _pick_tile(Lk, cfg["att_tk"], 128)   # lane axis of the score tile
    grid = (BH, Lq // tq, Lk // tk)

    kernel = functools.partial(_flash_kernel, mxu_dtype=md)

    in_bytes = jnp.dtype(qh.dtype).itemsize
    cost = pl.CostEstimate(
        flops=4 * BH * Lq * Lk * dh,                    # q@k^T and p@v
        transcendentals=BH * Lq * Lk,                   # exp
        bytes_accessed=(BH * Lq * dh + 2 * BH * Lk * dh) * in_bytes
        + BH * Lq * dh * jnp.dtype(od).itemsize,
    )

    return pl.pallas_call(
        kernel,
        out_shape=jax.ShapeDtypeStruct((BH, Lq, dh), od),
        grid_spec=pltpu.PrefetchScalarGridSpec(
            num_scalar_prefetch=0,
            grid=grid,
            in_specs=[
                pl.BlockSpec((None, tq, dh), lambda b, i, j: (b, i, 0)),
                pl.BlockSpec((None, tk, dh), lambda b, i, j: (b, j, 0)),
                pl.BlockSpec((None, tk, dh), lambda b, i, j: (b, j, 0)),
            ],
            out_specs=pl.BlockSpec((None, tq, dh), lambda b, i, j: (b, i, 0)),
            scratch_shapes=[
                pltpu.VMEM((tq, dh), jnp.float32),   # acc
                pltpu.VMEM((tq, 1), jnp.float32),    # running max
                pltpu.VMEM((tq, 1), jnp.float32),    # running sum
            ],
        ),
        compiler_params=pltpu.CompilerParams(
            dimension_semantics=("parallel", "parallel", "arbitrary"),
            vmem_limit_bytes=cfg["vmem_limit"],
        ),
        cost_estimate=cost,
    )(qh, kh, vh)


# ---------------------------------------------------------------------------
# Parameter preparation (done once, not per forward call)
# ---------------------------------------------------------------------------
MHAParams = collections.namedtuple(
    "MHAParams", ["wq", "wk", "wv", "wo", "w_qkv", "n_head"])


def prepare_mha_params(wq, wk, wv, wo, n_head):
    """Fold the 1/sqrt(d_head) score scale into Wq (exact, O(D^2) once) and
    pre-build the fused (D, 3D) QKV weight so no per-call concat/materialize."""
    d_model = wq.shape[0]
    assert d_model % n_head == 0
    d_head = d_model // n_head
    wq_s = wq * jnp.asarray(d_head ** (-0.5), wq.dtype)
    w_qkv = jnp.concatenate([wq_s, wk, wv], axis=1)
    return MHAParams(wq_s, wk, wv, wo, w_qkv, n_head)


# ---------------------------------------------------------------------------
# MHA wrapper
# ---------------------------------------------------------------------------
def _split_heads(x, B, L, H, dh):
    # (B*L, D) -> (B*H, L, dh); head-major so each attention block's last dim
    # equals the full array dim (legal block for any d_head, DMA-sliced heads).
    return x.reshape(B, L, H, dh).transpose(0, 2, 1, 3).reshape(B * H, L, dh)


def _merge_heads(x, B, L, H, dh):
    # (B*H, L, dh) -> (B*L, D)
    return x.reshape(B, H, L, dh).transpose(0, 2, 1, 3).reshape(B * L, H * dh)


def mha_forward(q, k, v, params, *, compute_dtype=None, self_attention=None):
    """q: (B, Lq, D), k/v: (B, Lk, D) -> (B, Lq, D).

    compute_dtype=None keeps the input dtype end-to-end (exact f32 path);
    compute_dtype=jnp.bfloat16 is the recommended production setting (bf16 MXU
    inputs, f32 accumulation)."""
    Wq = params.wq  # noqa: F841  (kept for clarity; already scale-folded)
    B, Lq, D = q.shape
    Lk = k.shape[1]
    H = params.n_head
    assert D % H == 0
    dh = D // H
    cd = compute_dtype

    if self_attention is None:
        self_attention = (q is k) and (k is v)

    if self_attention:
        # Fused QKV projection: one kernel launch, activation read once.
        qkv = linear(q.reshape(B * Lq, D), params.w_qkv, compute_dtype=cd)
        qp, kp, vp = qkv[:, :D], qkv[:, D:2 * D], qkv[:, 2 * D:]
    else:
        qp = linear(q.reshape(B * Lq, D), params.wq, compute_dtype=cd)
        kp = linear(k.reshape(B * Lk, D), params.wk, compute_dtype=cd)
        vp = linear(v.reshape(B * Lk, D), params.wv, compute_dtype=cd)

    qhh = _split_heads(qp, B, Lq, H, dh)
    khh = _split_heads(kp, B, Lk, H, dh)
    vhh = _split_heads(vp, B, Lk, H, dh)

    ctx = flash_attention(qhh, khh, vhh, mxu_dtype=cd or q.dtype)
    ctx = _merge_heads(ctx, B, Lq, H, dh)

    out = linear(ctx, params.wo, compute_dtype=cd, out_dtype=q.dtype)
    return out.reshape(B, Lq, D)


def mha_reference(q, k, v, raw_params, n_head):
    Wq, Wk, Wv, Wo = raw_params
    B, Lq, D = q.shape
    Lk = k.shape[1]
    d_head = D // n_head
    scale = d_head ** (-0.5)
    qp = (q @ Wq).reshape(B, Lq, n_head, d_head).transpose(0, 2, 1, 3)
    kp = (k @ Wk).reshape(B, Lk, n_head, d_head).transpose(0, 2, 1, 3)
    vp = (v @ Wv).reshape(B, Lk, n_head, d_head).transpose(0, 2, 1, 3)
    s = jnp.einsum("bhqd,bhkd->bhqk", qp, kp) * scale
    attn = jax.nn.softmax(s, axis=-1)
    o = jnp.einsum("bhqk,bhkd->bhqd", attn, vp)
    o = o.transpose(0, 2, 1, 3).reshape(B, Lq, D)
    return o @ Wo


if __name__ == "__main__":
    # Small shapes consistent with the module: batch=2, seq=8, d_model=32, heads=4
    B, L, D, H = 2, 8, 32, 4

    key = jax.random.PRNGKey(0)
    kq, kk, kv, kwq, kwk, kwv, kwo = jax.random.split(key, 7)

    q = jax.random.normal(kq, (B, L, D), dtype=jnp.float32)
    k = jax.random.normal(kk, (B, L, D), dtype=jnp.float32)
    v = jax.random.normal(kv, (B, L, D), dtype=jnp.float32)

    winit = 1.0 / math.sqrt(D)
    Wq = jax.random.normal(kwq, (D, D), dtype=jnp.float32) * winit
    Wk = jax.random.normal(kwk, (D, D), dtype=jnp.float32) * winit
    Wv = jax.random.normal(kwv, (D, D), dtype=jnp.float32) * winit
    Wo = jax.random.normal(kwo, (D, D), dtype=jnp.float32) * winit

    params = prepare_mha_params(Wq, Wk, Wv, Wo, n_head=H)  # once, not per call

    # 1) Cross-attention, exact f32 path (no approx ops -> tight tolerance).
    out = jax.block_until_ready(mha_forward(q, k, v, params))
    ref = mha_reference(q, k, v, (Wq, Wk, Wv, Wo), H)
    assert out.shape == (B, L, D)
    assert jnp.allclose(out, ref, atol=1e-3, rtol=1e-3), "mismatch vs reference"

    # 2) Self-attention path exercises the fused (D, 3D) QKV projection.
    out_sa = jax.block_until_ready(mha_forward(q, q, q, params))
    ref_sa = mha_reference(q, q, q, (Wq, Wk, Wv, Wo), H)
    assert jnp.allclose(out_sa, ref_sa, atol=1e-3, rtol=1e-3), "fused-QKV mismatch"

    # 3) bf16 MXU-input path (recommended production setting); f32 accumulation.
    out_bf = jax.block_until_ready(
        mha_forward(q, k, v, params, compute_dtype=jnp.bfloat16))
    rel = jnp.linalg.norm(out_bf.astype(jnp.float32) - ref) / jnp.linalg.norm(ref)
    assert rel < 0.05, f"bf16 path relative error too large: {rel}"

    print("KERNEL_OK")
</pallas_src>

<mosaic_0001>
module attributes {stable_mosaic.version = 11 : i64} {
  func.func @_linear_kernel(%arg0: i32, %arg1: i32, %arg2: i32, %arg3: memref<16x32xf32, #tpu.memory_space<vmem>>, %arg4: memref<32x32xf32, #tpu.memory_space<vmem>>, %arg5: memref<16x32xf32, #tpu.memory_space<vmem>>, %arg6: memref<16x32xf32, #tpu.memory_space<vmem>>) attributes {dimension_semantics = [#tpu.dimension_semantics<parallel>, #tpu.dimension_semantics<parallel>, #tpu.dimension_semantics<arbitrary>], iteration_bounds = array<i64: 1, 1, 1>, scalar_prefetch = 0 : i64, scratch_operands = 1 : i64, tpu.core_type = #tpu.core_type<tc>, window_params = [{transform_indices = @transform_0, window_bounds = array<i64: 16, 32>}, {transform_indices = @transform_1, window_bounds = array<i64: 32, 32>}, {transform_indices = @transform_2, window_bounds = array<i64: 16, 32>}]} {
    %c0_i32 = arith.constant 0 : i32
    %0 = arith.cmpi eq, %arg2, %c0_i32 : i32
    %1 = arith.extui %0 : i1 to i32
    %c0_i32_0 = arith.constant 0 : i32
    %2 = arith.cmpi ne, %1, %c0_i32_0 : i32
    scf.if %2 {
      %cst_10 = arith.constant 0.000000e+00 : f32
      %12 = vector.broadcast %cst_10 : f32 to vector<16x32xf32>
      %c0_11 = arith.constant 0 : index
      %c0_12 = arith.constant 0 : index
      %13 = vector.load %arg6[%c0_11, %c0_12] : memref<16x32xf32, #tpu.memory_space<vmem>>, vector<16x32xf32>
      tpu.vector_store %arg6[%c0_11, %c0_12], %12 {strides = array<i32>} : memref<16x32xf32, #tpu.memory_space<vmem>>, vector<16x32xf32>,
    } else {
    }
    %c0 = arith.constant 0 : index
    %c0_1 = arith.constant 0 : index
    %3 = vector.load %arg6[%c0, %c0_1] : memref<16x32xf32, #tpu.memory_space<vmem>>, vector<16x32xf32>
    %c0_2 = arith.constant 0 : index
    %c0_3 = arith.constant 0 : index
    %4 = vector.load %arg3[%c0_2, %c0_3] : memref<16x32xf32, #tpu.memory_space<vmem>>, vector<16x32xf32>
    %c0_4 = arith.constant 0 : index
    %c0_5 = arith.constant 0 : index
    %5 = vector.load %arg4[%c0_4, %c0_5] : memref<32x32xf32, #tpu.memory_space<vmem>>, vector<32x32xf32>
    %cst = arith.constant dense<0.000000e+00> : vector<16x32xf32>
    %6 = tpu.matmul %4, %5, %cst {dimension_numbers = #tpu.dot_dimension_numbers<[1], [0], [0], [1], [0, 0, 1, 1], [], []>} : vector<16x32xf32>, vector<32x32xf32>, vector<16x32xf32> -> vector<16x32xf32>
    %7 = arith.addf %3, %6 : vector<16x32xf32>
    %c0_6 = arith.constant 0 : index
    %c0_7 = arith.constant 0 : index
    %8 = vector.load %arg6[%c0_6, %c0_7] : memref<16x32xf32, #tpu.memory_space<vmem>>, vector<16x32xf32>
    tpu.vector_store %arg6[%c0_6, %c0_7], %7 {strides = array<i32>} : memref<16x32xf32, #tpu.memory_space<vmem>>, vector<16x32xf32>,
    %c0_i32_8 = arith.constant 0 : i32
    %9 = arith.cmpi eq, %arg2, %c0_i32_8 : i32
    %10 = arith.extui %9 : i1 to i32
    %c0_i32_9 = arith.constant 0 : i32
    %11 = arith.cmpi ne, %10, %c0_i32_9 : i32
    scf.if %11 {
      %c0_10 = arith.constant 0 : index
      %c0_11 = arith.constant 0 : index
      %12 = vector.load %arg6[%c0_10, %c0_11] : memref<16x32xf32, #tpu.memory_space<vmem>>, vector<16x32xf32>
      %c0_12 = arith.constant 0 : index
      %c0_13 = arith.constant 0 : index
      %13 = vector.load %arg5[%c0_12, %c0_13] : memref<16x32xf32, #tpu.memory_space<vmem>>, vector<16x32xf32>
      tpu.vector_store %arg5[%c0_12, %c0_13], %12 {strides = array<i32>} : memref<16x32xf32, #tpu.memory_space<vmem>>, vector<16x32xf32>,
    } else {
    }
    return
  }
  func.func @transform_0(%arg0: i32, %arg1: i32, %arg2: i32) -> (i32, i32) {
    %c0_i32 = arith.constant 0 : i32
    return %arg0, %arg2 : i32, i32
  }
  func.func @transform_1(%arg0: i32, %arg1: i32, %arg2: i32) -> (i32, i32) {
    %c0_i32 = arith.constant 0 : i32
    return %arg2, %arg1 : i32, i32
  }
  func.func @transform_2(%arg0: i32, %arg1: i32, %arg2: i32) -> (i32, i32) {
    %c0_i32 = arith.constant 0 : i32
    return %arg0, %arg1 : i32, i32
  }
}

</mosaic_0001>

<bundles_post_ra>
// kernel: tpu_custom_call.1
= control target key start
LH: loop header
LB: loop body
LE: loop exit
PB: predicated region body
PF: predicated region fallthrough
CT: control target
= control target key end

     0   :  { %7 = vsyncpa [#allocation4], 0  ;;  %s345_s0 = inlined_call_operand.hbm [shape: f32[16,32], index: 0, kind: input, shape index: {}]   ;;  %s346_s1 = inlined_call_operand.hbm [shape: f32[32,32], index: 1, kind: input, shape index: {}]   ;;  %s347_s2 = inlined_call_operand.hbm [shape: f32[16,32], index: 2, kind: output, shape index: {}]  }
   0x1   :  { %8 = vsyncpa [#allocation7], 0 }
   0x2   :  { %9 = vsyncpa [#allocation5], 0  ;;  %s271_s9 = smov [#allocation3]   ;;  %s199_s13 = scalar_lea.hbm %s345_s0, 256 }
   0x3   :  { %s15_s10 = sshll.u32 %s271_s9, 4  ;;  %p200_p0 = scmp.ne.s32.totalorder %s345_s0, %s199_s13  ;;  %s16_s10 = int_to_ptr.vmem [resolvable:$true] %s15_s10 }
   0x4   :  { %p203_p1 = scmp.lt.u32.totalorder %s199_s13, %s345_s0 }
   0x6   :  { %p205_p2 = pnand %p203_p1, %p200_p0 }
   0x8   :  { %208 = shalt.err (!%p205_p2)
}
   0x9   :  { %s209_s18 = scalar_lea.vmem %s16_s10, 256  ;;  %p214_p4 = scmp.lt.s32.totalorder %s16_s10, %s16_s10 }
   0xa   :  { %p210_p3 = scmp.ne.s32.totalorder %s16_s10, %s209_s18  ;;  %p215_p5 = scmp.lt.s32.totalorder %s209_s18, %s209_s18 }
   0xc   :  { %p216_p6 = por %p215_p5, %p214_p4 }
   0xe   :  { %p217_p7 = pnand %p216_p6, %p210_p3 }
  0x10   :  { %220 = shalt.err (!%p217_p7)
}
  0x11   :  { %s272_s19 = smov 128   ;;  %s273_s20 = smov 8  }
  0x12   :  { %21 = dma.hbm_to_vmem [thread:$0]  %s345_s0, 256, %s16_s10, [#allocation4], %s272_s19, %s272_s19, %s273_s20  }
  0x13   :  { %s274_s23 = smov [#allocation6]   ;;  %s221_s27 = scalar_lea.hbm %s346_s1, 512 }
  0x14   :  { %s27_s24 = sshll.u32 %s274_s23, 4  ;;  %p222_p8 = scmp.ne.s32.totalorder %s346_s1, %s221_s27  ;;  %s28_s24 = int_to_ptr.vmem [resolvable:$true] %s27_s24 }
  0x15   :  { %p225_p9 = scmp.lt.u32.totalorder %s221_s27, %s346_s1 }
  0x17   :  { %p227_p10 = pnand %p225_p9, %p222_p8 }
  0x19   :  { %230 = shalt.err (!%p227_p10)
}
  0x1a   :  { %s231_s4 = scalar_lea.vmem %s28_s24, 512  ;;  %p236_p12 = scmp.lt.s32.totalorder %s28_s24, %s28_s24 }
  0x1b   :  { %p232_p11 = scmp.ne.s32.totalorder %s28_s24, %s231_s4  ;;  %p237_p13 = scmp.lt.s32.totalorder %s231_s4, %s231_s4 }
  0x1d   :  { %p238_p0 = por %p237_p13, %p236_p12 }
  0x1f   :  { %p239_p1 = pnand %p238_p0, %p232_p11 }
  0x21   :  { %242 = shalt.err (!%p239_p1)
}
  0x22   :  { %33 = dma.hbm_to_vmem [thread:$0]  %s346_s1, 512, %s28_s24, [#allocation7], %s272_s19, %s272_s19, %s273_s20  }
  0x23   :  { %265 = dma.done.wait [#allocation4], 256  }
  0x24   :  { %266 = vsyncadd [#allocation4], 4294967040 }
  0x25   :  { %267 = dma.done.wait [#allocation7], 512  }
  0x26   :  { %268 = vsyncadd [#allocation7], 4294966784  ;;  %vm44_vm0 = vcmask 261120   ;;  %v275_v0 = vmov 0.0   ;;  %v51_v1 = vld [vmem:[#allocation6] sm:$0xff]  ;;  %v52_v2 = vld [vmem:[#allocation6 + $0x8] sm:$0xff] }
  0x27   :  { %46 = vst.msk [vmem:[#allocation2 + $0x8] sm:$0xff] %vm44_vm0, %v275_v0  ;;  %45 = vst.msk [vmem:[#allocation2] sm:$0xff] %vm44_vm0, %v275_v0  ;;  %v53_v3 = vld [vmem:[#allocation6 + $0x10] sm:$0xff]  ;;  %v185_v4 = vpack.c.bf16 %v52_v2, %v51_v1  ;;  %v54_v5 = vld [vmem:[#allocation6 + $0x18] sm:$0xff]  ;;  %s276_s1 = smov [#allocation8]  }
  0x28   :  { %v49_v6 = vld [vmem:[#allocation3] sm:$0xff]  ;;  %v189_v7 = vpack.c.bf16 %v54_v5, %v53_v3  ;;  %v50_v8 = vld [vmem:[#allocation3 + $0x8] sm:$0xff]  ;;  %s153_s6 = sshll.u32 %s276_s1, 4  ;;  %s154_s6 = int_to_ptr.vmem [resolvable:$true] %s153_s6 }
  0x29   :  { %182 = vmatprep.mubr.msk.f32.mxu0 %vm44_vm0, %v49_v6  ;;  %186 = vmatprep.subr.bf16.mxu0 %v185_v4  ;;  %s243_s7 = scalar_lea.vmem %s154_s6, 256  ;;  %p248_p3 = scmp.lt.s32.totalorder %s154_s6, %s154_s6 }
  0x2a   :  { %188 = vmatpush3.bf16.msra.mxu0 %v185_v4  ;;  %p244_p2 = scmp.ne.s32.totalorder %s154_s6, %s243_s7  ;;  %p249_p4 = scmp.lt.s32.totalorder %s243_s7, %s243_s7 }
  0x2b   :  { %190 = vmatprep.subr.bf16.mxu0 %v189_v7 }
  0x2c   :  { %p250_p5 = por %p249_p4, %p248_p3 }
  0x2e   :  { %192 = vmatpush3.bf16.msra.mxu0 %v189_v7  ;;  %v48_v9 = vld [vmem:[#allocation2 + $0x8] sm:$0xff]  ;;  %v47_v10 = vld [vmem:[#allocation2] sm:$0xff]  ;;  %p251_p6 = pnand %p250_p5, %p244_p2 }
  0x31   :  { %183 = vmatmul.mubr.msk.f32.vlgmr.msra.gmra.mrb[0].mxu0 %vm44_vm0, %v50_v8 }
 0x104   :  { %v184_v11 = vpop.f32.mrb[0].mxu0 }
 0x105   :  { %v138_v12 = vadd.f32 %v184_v11, %v48_v9  ;;  %v128_v13 = vpop.f32.mrb[1].mxu0 }
 0x106   :  { %v137_v14 = vadd.f32 %v128_v13, %v47_v10 }
 0x107   :  { %140 = vst.msk [vmem:[#allocation2 + $0x8] sm:$0xff] %vm44_vm0, %v138_v12 }
 0x108   :  { %139 = vst.msk [vmem:[#allocation2] sm:$0xff] %vm44_vm0, %v137_v14 }
 0x10e   :  { %v145_v15 = vld [vmem:[#allocation2 + $0x8] sm:$0xff] }
 0x10f   :  { %v144_v16 = vld [vmem:[#allocation2] sm:$0xff]  ;;  %147 = vst.msk [vmem:[#allocation8 + $0x8] sm:$0xff] %vm44_vm0, %v145_v15 }
 0x110   :  { %146 = vst.msk [vmem:[#allocation8] sm:$0xff] %vm44_vm0, %v144_v16 }
 0x111   :  { %254 = shalt.err (!%p251_p6)
}
 0x112   :  { %s255_s10 = scalar_lea.hbm %s347_s2, 256 }
 0x113   :  { %p256_p7 = scmp.ne.s32.totalorder %s347_s2, %s255_s10  ;;  %p259_p8 = scmp.lt.u32.totalorder %s255_s10, %s347_s2 }
 0x115   :  { %p261_p9 = pnand %p259_p8, %p256_p7 }
 0x117   :  { %264 = shalt.err (!%p261_p9)
}
 0x118   :  { %159 = dma.vmem_to_hbm [thread:$0]  %s154_s6, 256, %s347_s2, [#allocation5], %s272_s19, %s272_s19, %s273_s20  }
 0x119   :  { %269 = dma.done.wait [#allocation5], 256  }
 0x11a   :  { %270 = vsyncadd [#allocation5], 4294967040 }
 0x11b   :  { %163 = vsyncpa [#allocation4], 1 }
 0x11c   :  { %164 = vsyncpa [#allocation7], 1 }
 0x11d   :  { %165 = vsyncpa [#allocation5], 1 }

</bundles_post_ra>
